<compile_context>
chip_gen: v7x
topology: tpu7x:2x2x1
jax: 0.10.0
libtpu: 0.0.40
codegen_flags: <defaults>
</compile_context>

<pallas_src>
import jax
import jax.numpy as jnp
from jax.experimental import pallas as pl
from jax.experimental.pallas import tpu as pltpu


_TB_MAX_ROWS = 16384       # per-step row tile cap (VMEM lane-pads K: 10 -> 128)
_GRIDLESS_MAX_ROWS = 8192  # below this, one VMEM-resident block, no grid


def _round_up(n, m):
    return ((n + m - 1) // m) * m


def _linear_rowwise_kernel(x_ref, w_ref, b_ref, o_ref):
    """y[i] = sum_k x[i, k] * w[0, k] + b   (VPU multiply + XLU lane reduce).

    x_ref: (TB, K) VMEM  -- natural row-major activations (any float dtype)
    w_ref: (1, K)  f32 VMEM -- resident weight row (PyTorch (out=1, in=K) layout)
    b_ref: (1,)    f32 SMEM -- scalar bias
    o_ref: (TB, 1) f32 VMEM -- per-row output column
    """
    x = x_ref[...].astype(jnp.float32)   # bf16 -> f32 convert-on-load hides under DMA
    w = w_ref[...].astype(jnp.float32)   # (1, K) broadcasts over rows
    o_ref[...] = jnp.sum(x * w, axis=1, keepdims=True) + b_ref[0]


def prepare_params(weight, bias):
    """One-time parameter preprocessing (kept out of the per-call wrapper).

    nn.Linear stores weight as (out_features, in_features) = (1, K), which is
    exactly the (1, K) broadcast row the kernel wants -- no reshape/transpose.
    """
    out_f, in_f = weight.shape
    assert out_f == 1, "kernel is specialized for out_features == 1"
    w_row = weight.astype(jnp.float32)                    # (1, K)
    b_vec = bias.reshape((out_f,)).astype(jnp.float32)    # (1,) scalar for SMEM
    return w_row, b_vec


def simple_model_forward(x, w_row, b_vec, *, tb=None):
    """nn.Linear(10 -> 1) forward: y = x @ W^T + b, y shape (B, 1).

    x     : (B, K) float (f32 or bf16; cast happens inside the kernel)
    w_row : (1, K) f32   (from prepare_params)
    b_vec : (1,)   f32
    tb    : optional explicit row-tile size (forces the grid path; for tests)
    """
    B, K = x.shape
    out_shape = jax.ShapeDtypeStruct((B, 1), jnp.float32)
    cost = pl.CostEstimate(
        flops=2 * B * K,
        transcendentals=0,
        bytes_accessed=B * K * x.dtype.itemsize + (B + K + 1) * 4,
    )

    if tb is None and B <= _GRIDLESS_MAX_ROWS:
        # Small batch: single VMEM-resident block, no grid / pipeline machinery.
        return pl.pallas_call(
            _linear_rowwise_kernel,
            out_shape=out_shape,
            in_specs=[
                pl.BlockSpec(memory_space=pltpu.MemorySpace.VMEM),   # x
                pl.BlockSpec(memory_space=pltpu.MemorySpace.VMEM),   # weight row
                pl.BlockSpec(memory_space=pltpu.MemorySpace.SMEM),   # scalar bias
            ],
            out_specs=pl.BlockSpec(memory_space=pltpu.MemorySpace.VMEM),
            cost_estimate=cost,
        )(x, w_row, b_vec)

    # Large batch: 1-D grid over row tiles.  Double-buffered 16K-row tiles give
    # ~640 KiB of HBM read per step, so the fixed per-step overhead is hidden.
    if tb is None:
        # >= 2 balanced tiles (v7x megacore sharding) capped by the VMEM budget.
        tb = min(_TB_MAX_ROWS, _round_up(pl.cdiv(B, 2), 8))
    tb = max(8, min(_round_up(tb, 8), _round_up(B, 8)))
    num_tiles = pl.cdiv(B, tb)  # partial final block is masked by Pallas (no pad)

    return pl.pallas_call(
        _linear_rowwise_kernel,
        out_shape=out_shape,
        grid=(num_tiles,),
        in_specs=[
            pl.BlockSpec((tb, K), lambda i: (i, 0)),                 # streamed x rows
            pl.BlockSpec((1, K), lambda i: (0, 0)),                  # resident weight
            pl.BlockSpec(memory_space=pltpu.MemorySpace.SMEM),       # scalar bias
        ],
        out_specs=pl.BlockSpec((tb, 1), lambda i: (i, 0)),
        compiler_params=pltpu.CompilerParams(
            dimension_semantics=("parallel",),       # independent tiles -> both TCs
            vmem_limit_bytes=48 * 1024 * 1024,       # v5e default 16 MiB is too small
        ),
        cost_estimate=cost,
    )(x, w_row, b_vec)


if __name__ == "__main__":
    key = jax.random.PRNGKey(0)
    kx, kw, kb, kx2, kx3 = jax.random.split(key, 5)

    B, IN, OUT = 8, 10, 1

    # Deterministic "PyTorch-like" init: U(-1/sqrt(in), 1/sqrt(in)).
    bound = 1.0 / jnp.sqrt(jnp.float32(IN))
    weight = jax.random.uniform(kw, (OUT, IN), jnp.float32, -bound, bound)
    bias = jax.random.uniform(kb, (OUT,), jnp.float32, -bound, bound)

    # One-time parameter preprocessing.
    w_row, b_vec = prepare_params(weight, bias)

    # 1) Small-batch gridless path.
    x = jax.random.normal(kx, (B, IN), jnp.float32)
    y = jax.block_until_ready(simple_model_forward(x, w_row, b_vec))
    y_ref = x @ weight.T + bias
    assert y.shape == (B, OUT)
    assert jnp.allclose(y, y_ref, atol=1e-5, rtol=1e-5)

    # 2) Grid path: >= 2 tiles, ragged final tile, no wrapper pad/transpose.
    B2 = 3000
    x2 = jax.random.normal(kx2, (B2, IN), jnp.float32)
    y2 = jax.block_until_ready(simple_model_forward(x2, w_row, b_vec, tb=1024))
    y2_ref = x2 @ weight.T + bias
    assert y2.shape == (B2, OUT)
    assert jnp.allclose(y2, y2_ref, atol=1e-5, rtol=1e-5)

    # 3) bf16 activations: no wrapper upcast -- the kernel casts on load.
    x3 = jax.random.normal(kx3, (B, IN), jnp.float32).astype(jnp.bfloat16)
    y3 = jax.block_until_ready(simple_model_forward(x3, w_row, b_vec))
    y3_ref = x3.astype(jnp.float32) @ weight.T + bias
    assert y3.shape == (B, OUT)
    assert jnp.allclose(y3, y3_ref, atol=5e-2, rtol=5e-2)

    print("KERNEL_OK")
</pallas_src>

<mosaic_0001>
module attributes {stable_mosaic.version = 11 : i64} {
  func.func @_linear_rowwise_kernel(%arg0: memref<8x10xf32, #tpu.memory_space<vmem>>, %arg1: memref<1x10xf32, #tpu.memory_space<vmem>>, %arg2: memref<1xf32, #tpu.memory_space<smem>>, %arg3: memref<8x1xf32, #tpu.memory_space<vmem>>) attributes {dimension_semantics = [], scalar_prefetch = 0 : i64, scratch_operands = 0 : i64, tpu.core_type = #tpu.core_type<tc>} {
    %c0 = arith.constant 0 : index
    %c0_0 = arith.constant 0 : index
    %0 = vector.load %arg0[%c0, %c0_0] : memref<8x10xf32, #tpu.memory_space<vmem>>, vector<8x10xf32>
    %c0_1 = arith.constant 0 : index
    %c0_2 = arith.constant 0 : index
    %1 = vector.load %arg1[%c0_1, %c0_2] : memref<1x10xf32, #tpu.memory_space<vmem>>, vector<1x10xf32>
    %2 = vector.broadcast %1 : vector<1x10xf32> to vector<8x10xf32>
    %3 = arith.mulf %0, %2 : vector<8x10xf32>
    %cst = arith.constant dense<0.000000e+00> : vector<8xf32>
    %4 = vector.multi_reduction <add>, %3, %cst [1] : vector<8x10xf32> to vector<8xf32>
    %5 = vector.shape_cast %4 : vector<8xf32> to vector<8x1xf32>
    %c0_3 = arith.constant 0 : index
    %6 = memref.load %arg2[%c0_3] : memref<1xf32, #tpu.memory_space<smem>>
    %7 = vector.broadcast %6 : f32 to vector<8x1xf32>
    %8 = arith.addf %5, %7 : vector<8x1xf32>
    %c0_4 = arith.constant 0 : index
    %c0_5 = arith.constant 0 : index
    %9 = vector.load %arg3[%c0_4, %c0_5] : memref<8x1xf32, #tpu.memory_space<vmem>>, vector<8x1xf32>
    tpu.vector_store %arg3[%c0_4, %c0_5], %8 {strides = array<i32>} : memref<8x1xf32, #tpu.memory_space<vmem>>, vector<8x1xf32>,
    return
  }
}

</mosaic_0001>

<bundles_post_ra>
// kernel: tpu_custom_call.1
= control target key start
LH: loop header
LB: loop body
LE: loop exit
PB: predicated region body
PF: predicated region fallthrough
CT: control target
= control target key end

     0   :  { %9 = vsyncpa [#allocation4], 0  ;;  %s76_s12 = smov [#allocation3]   ;;  %s118_s0 = inlined_call_operand.hbm [shape: f32[8,10], index: 0, kind: input, shape index: {}]   ;;  %s119_s1 = inlined_call_operand.vmem [shape: f32[1,10], index: 1, kind: input, shape index: {}]   ;;  %s120_s2 = inlined_call_operand.<no memory space> [shape: f32[1], index: 2, kind: input, shape index: {}]   ;;  %s121_s3 = inlined_call_operand.vmem [shape: f32[8,1], index: 3, kind: output, shape index: {}]  }
   0x1   :  { %s16_s13 = sshll.u32 %s76_s12, 4  ;;  %s52_s16 = scalar_lea.hbm %s118_s0, 128  ;;  %s17_s13 = int_to_ptr.vmem [resolvable:$true] %s16_s13 }
   0x2   :  { %p53_p0 = scmp.ne.s32.totalorder %s118_s0, %s52_s16  ;;  %p56_p1 = scmp.lt.u32.totalorder %s52_s16, %s118_s0 }
   0x4   :  { %p58_p2 = pnand %p56_p1, %p53_p0 }
   0x6   :  { %61 = shalt.err (!%p58_p2)
}
   0x7   :  { %s62_s21 = scalar_lea.vmem %s17_s13, 128  ;;  %p67_p4 = scmp.lt.s32.totalorder %s17_s13, %s17_s13 }
   0x8   :  { %p63_p3 = scmp.ne.s32.totalorder %s17_s13, %s62_s21  ;;  %p68_p5 = scmp.lt.s32.totalorder %s62_s21, %s62_s21 }
   0xa   :  { %p69_p6 = por %p68_p5, %p67_p4 }
   0xc   :  { %p70_p7 = pnand %p69_p6, %p63_p3 }
   0xe   :  { %73 = shalt.err (!%p70_p7)
}
   0xf   :  { %19 = dma.hbm_to_vmem [thread:$0]  %s118_s0, 128, %s17_s13, [#allocation4]  }
  0x10   :  { %74 = dma.done.wait [#allocation4], 128  }
  0x11   :  { %75 = vsyncadd [#allocation4], 4294967168  ;;  %v27_v0 = vld [vmem:[#allocation3] sm:$0xff]  ;;  %vm36_vm0 = vcmask 80896   ;;  %v41_v4 = vstv %s120_s2  ;;  %vm43_vm1 = vcmask 7168  }
  0x12   :  { %v50_v1 = vld [vmem:[%s119_s1] ss:$0 sm:$0xff] }
  0x13   :  { %v35_v2 = vmul.f32 %v50_v1, %v27_v0 }
  0x15   :  { %v37_v3 = vsel %vm36_vm0, %v35_v2, 0.0 }
  0x16   :  { %38 = vadd.xlane.f32.xlu0 %v37_v3 }
  0xa3   :  { %v39_v5 = vpop.xlane.xlu0 %38 }
  0xa4   :  { %v42_v6 = vadd.f32 %v41_v4, %v39_v5 }
  0xa6   :  { %44 = vst.msk [vmem:[%s121_s3] sm:$0xff] %vm43_vm1, %v42_v6 }
  0xa7   :  { %49 = vsyncpa [#allocation4], 1 }

</bundles_post_ra>
